<compile_context>
chip_gen: v5e
topology: v5e:2x2
jax: 0.10.0
libtpu: 0.0.40
codegen_flags: <defaults>
</compile_context>

<pallas_src>
import jax
import jax.numpy as jnp
from jax.experimental import pallas as pl
from jax.experimental.pallas import tpu as pltpu

DEFAULT_DTYPE = jnp.complex64  # mirrors quairkit get_dtype() (torch.complex64)

_LANE = 128      # lane width
_SUBLANE = 8     # f32 sublane
_MAX_TB = 256    # M (batch) tile cap
_MAX_TN = 1024   # N tile cap
_MAX_TK = 1024   # K tile cap
# < v7x's 64 MiB physical VMEM (worst case working set ~34 MiB with Buffered(3) B).
_VMEM_LIMIT_BYTES = 48 * 1024 * 1024


def _round_up(x: int, m: int) -> int:
    return ((x + m - 1) // m) * m


def _pad_dim(dim: int) -> int:
    """Pad the state dimension so it tiles cleanly (lane-dense, divisible by TN/TK)."""
    if dim <= _MAX_TN:
        return _round_up(dim, _LANE)
    return _round_up(dim, _MAX_TN)


def _pad_batch(batch: int) -> int:
    if batch <= _MAX_TB:
        return _round_up(batch, _SUBLANE)
    return _round_up(batch, _MAX_TB)


def _split_tile(n: int, unit: int) -> int:
    """Largest multiple of `unit` dividing n and <= n // 2 (falls back to n)."""
    t = (n // 2) // unit * unit
    while t >= unit:
        if n % t == 0:
            return t
        t -= unit
    return n


def _pick_tiles(M: int, N: int, K: int):
    TB = M if M <= _MAX_TB else _MAX_TB
    TN = N if N <= _MAX_TN else _MAX_TN
    TK = K if K <= _MAX_TK else _MAX_TK
    # v7x has two TensorCores: make sure at least one "parallel" grid axis has
    # >= 2 blocks when the problem is big enough to split (harmless on v5e/v6e).
    if M // TB == 1 and N // TN == 1:
        if N >= 2 * _LANE:
            TN = _split_tile(N, _LANE)
        elif M >= 2 * _SUBLANE:
            TB = _split_tile(M, _SUBLANE)
    return TB, TN, TK


def _b_block_spec(block_shape, index_map):
    """B-operand BlockSpec with a deeper pipeline (helps the mem-bound regime,
    especially v5e's lower HBM bandwidth).  Falls back gracefully if this JAX
    version does not support `pipeline_mode`."""
    if hasattr(pl, "Buffered"):
        try:
            return pl.BlockSpec(block_shape, index_map, pipeline_mode=pl.Buffered(3))
        except TypeError:
            pass
    return pl.BlockSpec(block_shape, index_map)


# ---------------------------------------------------------------------------
# Kernels: complex matmul as 4 real MXU dots, f32 accumulation.
# ---------------------------------------------------------------------------
def _cmatmul_kernel(ar_ref, ai_ref, br_ref, bi_ref, or_ref, oi_ref,
                    accr_ref, acci_ref):
    """K-tiled path: VMEM f32 accumulators, init/finalize via pl.when."""
    @pl.when(pl.program_id(2) == 0)
    def _():
        accr_ref[...] = jnp.zeros_like(accr_ref)
        acci_ref[...] = jnp.zeros_like(acci_ref)

    ar = ar_ref[...]
    ai = ai_ref[...]
    # bf16 B (if enabled) is widened in VMEM; its HBM stream is still halved.
    br = br_ref[...].astype(jnp.float32)
    bi = bi_ref[...].astype(jnp.float32)

    accr_ref[...] += (jnp.dot(ar, br, preferred_element_type=jnp.float32)
                      - jnp.dot(ai, bi, preferred_element_type=jnp.float32))
    acci_ref[...] += (jnp.dot(ar, bi, preferred_element_type=jnp.float32)
                      + jnp.dot(ai, br, preferred_element_type=jnp.float32))

    @pl.when(pl.program_id(2) == pl.num_programs(2) - 1)
    def _():
        or_ref[...] = accr_ref[...]
        oi_ref[...] = acci_ref[...]


def _cmatmul_kernel_single_k(ar_ref, ai_ref, br_ref, bi_ref, or_ref, oi_ref):
    """Fast path (whole K in one tile): no scratch, no branches."""
    ar = ar_ref[...]
    ai = ai_ref[...]
    br = br_ref[...].astype(jnp.float32)
    bi = bi_ref[...].astype(jnp.float32)
    or_ref[...] = (jnp.dot(ar, br, preferred_element_type=jnp.float32)
                   - jnp.dot(ai, bi, preferred_element_type=jnp.float32))
    oi_ref[...] = (jnp.dot(ar, bi, preferred_element_type=jnp.float32)
                   + jnp.dot(ai, br, preferred_element_type=jnp.float32))


def complex_matmul(a_re, a_im, b_re, b_im):
    """(a_re + i a_im) @ (b_re + i b_im) -> (o_re, o_im), all tile-aligned."""
    M, K = a_re.shape
    K2, N = b_re.shape
    assert K == K2 and a_im.shape == (M, K) and b_im.shape == (K2, N)

    TB, TN, TK = _pick_tiles(M, N, K)
    grid_m, grid_n, grid_k = M // TB, N // TN, K // TK

    out_shape = (jax.ShapeDtypeStruct((M, N), jnp.float32),
                 jax.ShapeDtypeStruct((M, N), jnp.float32))

    if grid_k == 1:
        grid_spec = pltpu.PrefetchScalarGridSpec(
            num_scalar_prefetch=0,
            grid=(grid_m, grid_n),
            in_specs=[
                pl.BlockSpec((TB, K), lambda i, j: (i, 0)),
                pl.BlockSpec((TB, K), lambda i, j: (i, 0)),
                pl.BlockSpec((K, TN), lambda i, j: (0, j)),
                pl.BlockSpec((K, TN), lambda i, j: (0, j)),
            ],
            out_specs=(
                pl.BlockSpec((TB, TN), lambda i, j: (i, j)),
                pl.BlockSpec((TB, TN), lambda i, j: (i, j)),
            ),
        )
        kernel = _cmatmul_kernel_single_k
        dims = ("parallel", "parallel")
    else:
        grid_spec = pltpu.PrefetchScalarGridSpec(
            num_scalar_prefetch=0,
            grid=(grid_m, grid_n, grid_k),
            in_specs=[
                pl.BlockSpec((TB, TK), lambda i, j, k: (i, k)),
                pl.BlockSpec((TB, TK), lambda i, j, k: (i, k)),
                _b_block_spec((TK, TN), lambda i, j, k: (k, j)),
                _b_block_spec((TK, TN), lambda i, j, k: (k, j)),
            ],
            out_specs=(
                pl.BlockSpec((TB, TN), lambda i, j, k: (i, j)),
                pl.BlockSpec((TB, TN), lambda i, j, k: (i, j)),
            ),
            scratch_shapes=[pltpu.VMEM((TB, TN), jnp.float32),
                            pltpu.VMEM((TB, TN), jnp.float32)],
        )
        kernel = _cmatmul_kernel
        dims = ("parallel", "parallel", "arbitrary")

    return pl.pallas_call(
        kernel,
        out_shape=out_shape,
        grid_spec=grid_spec,
        compiler_params=pltpu.CompilerParams(
            dimension_semantics=dims,
            vmem_limit_bytes=_VMEM_LIMIT_BYTES,
        ),
    )(a_re, a_im, b_re, b_im)


# ---------------------------------------------------------------------------
# Glue (jitted so the re/im split / pad / complex reconstruct fuse, and are
# skipped entirely when shapes are already aligned).
# ---------------------------------------------------------------------------
def _pack_operator(u, dim_p: int, b_dtype):
    """Split U^T into padded real/imag matrices — each element stored ONCE."""
    dim = u.shape[0]
    ut = u.T  # out = psi @ U^T
    b_re = jnp.real(ut).astype(jnp.float32)
    b_im = jnp.imag(ut).astype(jnp.float32)
    if dim_p != dim:
        pad = ((0, dim_p - dim), (0, dim_p - dim))
        b_re = jnp.pad(b_re, pad)
        b_im = jnp.pad(b_im, pad)
    return b_re.astype(b_dtype), b_im.astype(b_dtype)


@jax.jit
def _apply_operator(psi, b_re, b_im):
    batch, dim = psi.shape
    dim_p = b_re.shape[0]
    batch_p = _pad_batch(batch)

    a_re = jnp.real(psi).astype(jnp.float32)
    a_im = jnp.imag(psi).astype(jnp.float32)
    if (batch_p, dim_p) != (batch, dim):
        pad = ((0, batch_p - batch), (0, dim_p - dim))
        a_re = jnp.pad(a_re, pad)
        a_im = jnp.pad(a_im, pad)

    o_re, o_im = complex_matmul(a_re, a_im, b_re, b_im)

    if (batch_p, dim_p) != (batch, dim):
        o_re = o_re[:batch, :dim]
        o_im = o_im[:batch, :dim]
    return jax.lax.complex(o_re, o_im)


# ---------------------------------------------------------------------------
# Operator classes (bookkeeping mirrors quairkit/core/base.py).
# ---------------------------------------------------------------------------
class Operator:
    """JAX/Pallas analogue of quairkit's Operator base class (bookkeeping only)."""

    def __init__(self, backend=None, dtype=None):
        self.dtype = dtype if dtype is not None else DEFAULT_DTYPE
        self.device = "tpu"
        self.backend = backend if backend is not None else "default"

    def __setattr__(self, name, value):
        object.__setattr__(self, name, value)
        if isinstance(value, Operator):
            if getattr(value, "backend", None) is None:
                value.backend = self.backend
            if getattr(value, "dtype", None) is None:
                value.dtype = self.dtype

    def to(self, backend=None, dtype=None):
        if backend is not None:
            self.backend = backend
        if dtype is not None:
            self.dtype = dtype

    def forward(self, *inputs, **kwargs):
        raise NotImplementedError  # abstract in quairkit, same here

    def __call__(self, *inputs, **kwargs):
        return self.forward(*inputs, **kwargs)


class UnitaryOperator(Operator):
    """Concrete Operator: applies a fixed unitary U via the Pallas complex matmul."""

    def __init__(self, u, backend=None, dtype=None, use_bf16_b: bool = False):
        super().__init__(backend=backend, dtype=dtype)
        self.u = jnp.asarray(u, dtype=self.dtype)
        self.dim = int(self.u.shape[0])
        self.dim_p = _pad_dim(self.dim)
        self.use_bf16_b = use_bf16_b
        b_dtype = jnp.bfloat16 if use_bf16_b else jnp.float32
        # Hoisted per-operator preprocessing: split/padded U^T is built ONCE.
        self.b_re, self.b_im = _pack_operator(self.u, self.dim_p, b_dtype)

    def compose(self, other: "UnitaryOperator") -> "UnitaryOperator":
        """Host-side pre-composition: self.compose(other)(psi) == self(other(psi)).
        A chain of gates then costs a single pallas_call / one state round trip."""
        u_new = jnp.matmul(self.u, other.u, precision=jax.lax.Precision.HIGHEST)
        return UnitaryOperator(u_new, backend=self.backend, dtype=self.dtype,
                               use_bf16_b=self.use_bf16_b)

    def forward(self, psi):
        assert psi.ndim == 2 and psi.shape[-1] == self.dim
        return _apply_operator(psi.astype(self.dtype), self.b_re, self.b_im)


# ---------------------------------------------------------------------------
# Demo / self-check.
# ---------------------------------------------------------------------------
def _make_unitary(key, dim: int):
    """Deterministic dim x dim unitary via QR of a random complex matrix."""
    k1, k2 = jax.random.split(key)
    a = jax.random.normal(k1, (dim, dim), dtype=jnp.float32)
    b = jax.random.normal(k2, (dim, dim), dtype=jnp.float32)
    m = (a + 1j * b).astype(jnp.complex64)
    q, r = jnp.linalg.qr(m)
    d = jnp.diagonal(r)
    q = q * (d / jnp.abs(d))[None, :].conj()
    return q.astype(jnp.complex64)


def _random_state(key, batch: int, dim: int):
    kr, ki = jax.random.split(key)
    psi = (jax.random.normal(kr, (batch, dim), jnp.float32)
           + 1j * jax.random.normal(ki, (batch, dim), jnp.float32)).astype(jnp.complex64)
    return psi / jnp.linalg.norm(psi, axis=-1, keepdims=True)


if __name__ == "__main__":
    key = jax.random.PRNGKey(0)
    k_u, k_psi, k_ph, k_psi2 = jax.random.split(key, 4)

    # --- small dense test: 8 batched 5-qubit states (single-K fast path) ----
    batch, dim = 8, 32
    u = _make_unitary(k_u, dim)
    psi = _random_state(k_psi, batch, dim)

    op = UnitaryOperator(u)
    out = jax.block_until_ready(op.forward(psi))
    ref = psi @ u.T
    assert out.shape == (batch, dim) and out.dtype == jnp.complex64
    assert jnp.allclose(out, ref, atol=1e-4, rtol=1e-4)

    # --- gate chaining via host pre-composition: U^dagger (U psi) == psi ----
    op_dag = UnitaryOperator(u.conj().T)
    composed = op_dag.compose(op)          # one pallas_call for the whole chain
    out_id = jax.block_until_ready(composed.forward(psi))
    assert jnp.allclose(out_id, psi, atol=1e-3, rtol=1e-3)

    # --- multi-K-tile path: 11-qubit states (dim 2048 -> K-tiled accumulator)
    big_dim = 2048
    perm = (jnp.arange(big_dim) + 1) % big_dim
    phases = jnp.exp(
        1j * jax.random.uniform(k_ph, (big_dim,), minval=0.0, maxval=2.0 * jnp.pi)
    ).astype(jnp.complex64)
    u_big = jnp.zeros((big_dim, big_dim), jnp.complex64).at[
        jnp.arange(big_dim), perm].set(phases)   # shift-and-phase unitary
    psi_big = _random_state(k_psi2, batch, big_dim)

    out_big = jax.block_until_ready(UnitaryOperator(u_big).forward(psi_big))
    ref_big = psi_big[:, perm] * phases[None, :]  # exact reference
    assert jnp.allclose(out_big, ref_big, atol=1e-3, rtol=1e-3)

    print("KERNEL_OK")
</pallas_src>

<mosaic_0001>
module attributes {stable_mosaic.version = 11 : i64} {
  func.func @_cmatmul_kernel_single_k(%arg0: i32, %arg1: i32, %arg2: memref<8x128xf32, #tpu.memory_space<vmem>>, %arg3: memref<8x128xf32, #tpu.memory_space<vmem>>, %arg4: memref<128x128xf32, #tpu.memory_space<vmem>>, %arg5: memref<128x128xf32, #tpu.memory_space<vmem>>, %arg6: memref<8x128xf32, #tpu.memory_space<vmem>>, %arg7: memref<8x128xf32, #tpu.memory_space<vmem>>) attributes {dimension_semantics = [#tpu.dimension_semantics<parallel>, #tpu.dimension_semantics<parallel>], iteration_bounds = array<i64: 1, 1>, scalar_prefetch = 0 : i64, scratch_operands = 0 : i64, tpu.core_type = #tpu.core_type<tc>, window_params = [{transform_indices = @transform_0, window_bounds = array<i64: 8, 128>}, {transform_indices = @transform_1, window_bounds = array<i64: 8, 128>}, {transform_indices = @transform_2, window_bounds = array<i64: 128, 128>}, {transform_indices = @transform_3, window_bounds = array<i64: 128, 128>}, {transform_indices = @transform_4, window_bounds = array<i64: 8, 128>}, {transform_indices = @transform_5, window_bounds = array<i64: 8, 128>}]} {
    %c0 = arith.constant 0 : index
    %c0_0 = arith.constant 0 : index
    %0 = vector.load %arg2[%c0, %c0_0] : memref<8x128xf32, #tpu.memory_space<vmem>>, vector<8x128xf32>
    %c0_1 = arith.constant 0 : index
    %c0_2 = arith.constant 0 : index
    %1 = vector.load %arg3[%c0_1, %c0_2] : memref<8x128xf32, #tpu.memory_space<vmem>>, vector<8x128xf32>
    %c0_3 = arith.constant 0 : index
    %c0_4 = arith.constant 0 : index
    %2 = vector.load %arg4[%c0_3, %c0_4] : memref<128x128xf32, #tpu.memory_space<vmem>>, vector<128x128xf32>
    %c0_5 = arith.constant 0 : index
    %c0_6 = arith.constant 0 : index
    %3 = vector.load %arg5[%c0_5, %c0_6] : memref<128x128xf32, #tpu.memory_space<vmem>>, vector<128x128xf32>
    %cst = arith.constant dense<0.000000e+00> : vector<8x128xf32>
    %4 = tpu.matmul %0, %2, %cst {dimension_numbers = #tpu.dot_dimension_numbers<[1], [0], [0], [1], [0, 0, 1, 1], [], []>} : vector<8x128xf32>, vector<128x128xf32>, vector<8x128xf32> -> vector<8x128xf32>
    %cst_7 = arith.constant dense<0.000000e+00> : vector<8x128xf32>
    %5 = tpu.matmul %1, %3, %cst_7 {dimension_numbers = #tpu.dot_dimension_numbers<[1], [0], [0], [1], [0, 0, 1, 1], [], []>} : vector<8x128xf32>, vector<128x128xf32>, vector<8x128xf32> -> vector<8x128xf32>
    %6 = arith.subf %4, %5 : vector<8x128xf32>
    %c0_8 = arith.constant 0 : index
    %c0_9 = arith.constant 0 : index
    %7 = vector.load %arg6[%c0_8, %c0_9] : memref<8x128xf32, #tpu.memory_space<vmem>>, vector<8x128xf32>
    tpu.vector_store %arg6[%c0_8, %c0_9], %6 {strides = array<i32>} : memref<8x128xf32, #tpu.memory_space<vmem>>, vector<8x128xf32>,
    %cst_10 = arith.constant dense<0.000000e+00> : vector<8x128xf32>
    %8 = tpu.matmul %0, %3, %cst_10 {dimension_numbers = #tpu.dot_dimension_numbers<[1], [0], [0], [1], [0, 0, 1, 1], [], []>} : vector<8x128xf32>, vector<128x128xf32>, vector<8x128xf32> -> vector<8x128xf32>
    %cst_11 = arith.constant dense<0.000000e+00> : vector<8x128xf32>
    %9 = tpu.matmul %1, %2, %cst_11 {dimension_numbers = #tpu.dot_dimension_numbers<[1], [0], [0], [1], [0, 0, 1, 1], [], []>} : vector<8x128xf32>, vector<128x128xf32>, vector<8x128xf32> -> vector<8x128xf32>
    %10 = arith.addf %8, %9 : vector<8x128xf32>
    %c0_12 = arith.constant 0 : index
    %c0_13 = arith.constant 0 : index
    %11 = vector.load %arg7[%c0_12, %c0_13] : memref<8x128xf32, #tpu.memory_space<vmem>>, vector<8x128xf32>
    tpu.vector_store %arg7[%c0_12, %c0_13], %10 {strides = array<i32>} : memref<8x128xf32, #tpu.memory_space<vmem>>, vector<8x128xf32>,
    return
  }
  func.func @transform_0(%arg0: i32, %arg1: i32) -> (i32, i32) {
    %c0_i32 = arith.constant 0 : i32
    %c0_i32_0 = arith.constant 0 : i32
    return %arg0, %c0_i32 : i32, i32
  }
  func.func @transform_1(%arg0: i32, %arg1: i32) -> (i32, i32) {
    %c0_i32 = arith.constant 0 : i32
    %c0_i32_0 = arith.constant 0 : i32
    return %arg0, %c0_i32 : i32, i32
  }
  func.func @transform_2(%arg0: i32, %arg1: i32) -> (i32, i32) {
    %c0_i32 = arith.constant 0 : i32
    %c0_i32_0 = arith.constant 0 : i32
    return %c0_i32, %arg1 : i32, i32
  }
  func.func @transform_3(%arg0: i32, %arg1: i32) -> (i32, i32) {
    %c0_i32 = arith.constant 0 : i32
    %c0_i32_0 = arith.constant 0 : i32
    return %c0_i32, %arg1 : i32, i32
  }
  func.func @transform_4(%arg0: i32, %arg1: i32) -> (i32, i32) {
    %c0_i32 = arith.constant 0 : i32
    return %arg0, %arg1 : i32, i32
  }
  func.func @transform_5(%arg0: i32, %arg1: i32) -> (i32, i32) {
    %c0_i32 = arith.constant 0 : i32
    return %arg0, %arg1 : i32, i32
  }
}

</mosaic_0001>

<bundles_post_ra>
// kernel: custom-call.1
= control target key start
LH: loop header
LB: loop body
LE: loop exit
PB: predicated region body
PF: predicated region fallthrough
CT: control target
= control target key end

     0   :  { %s56_s0 = inlined_call_operand.hbm [shape: c64[8,32], index: 0, kind: input, shape index: {}]   ;;  %s57_s1 = inlined_call_operand.vmem [shape: f32[8,32], index: 1, kind: output, shape index: {}]  }
   0x1   :  { %s2_s8 = scalar_lea.hbm %s56_s0, 8 }
   0x2   :  { %3 = vsyncpa [#allocation0], 0  ;;  %s5_s9 = sshll.u32 %s2_s8, 4  ;;  %s7_s12 = sshll.u32 %s57_s1, 4  ;;  %s6_s9 = int_to_ptr.hbm [resolvable:$true] %s5_s9  ;;  %s8_s12 = int_to_ptr.vmem [resolvable:$true] %s7_s12 }
   0x3   :  { %10 = dma.hbm_to_vmem [thread:$0]  %s6_s9, 128, %s8_s12, [#allocation0] }
   0x4   :  { %38 = dma.done.wait [#allocation0], 128  }
   0x5   :  { %39 = vsyncadd [#allocation0], 4294967168 }
   0x6   :  { %13 = vsyncpa [#allocation0], 1 }

// kernel: custom-call
= control target key start
LH: loop header
LB: loop body
LE: loop exit
PB: predicated region body
PF: predicated region fallthrough
CT: control target
= control target key end

     0   :  { %2 = vsyncpa [#allocation0], 0  ;;  %s55_s0 = inlined_call_operand.hbm [shape: c64[8,32], index: 0, kind: input, shape index: {}]   ;;  %s56_s1 = inlined_call_operand.vmem [shape: f32[8,32], index: 1, kind: output, shape index: {}]  }
   0x1   :  { %s4_s8 = sshll.u32 %s55_s0, 4  ;;  %s6_s11 = sshll.u32 %s56_s1, 4  ;;  %s5_s8 = int_to_ptr.hbm [resolvable:$true] %s4_s8  ;;  %s7_s11 = int_to_ptr.vmem [resolvable:$true] %s6_s11 }
   0x2   :  { %9 = dma.hbm_to_vmem [thread:$0]  %s5_s8, 128, %s7_s11, [#allocation0] }
   0x3   :  { %37 = dma.done.wait [#allocation0], 128  }
   0x4   :  { %38 = vsyncadd [#allocation0], 4294967168 }
   0x5   :  { %12 = vsyncpa [#allocation0], 1 }

// kernel: custom-call.2
= control target key start
LH: loop header
LB: loop body
LE: loop exit
PB: predicated region body
PF: predicated region fallthrough
CT: control target
= control target key end

     0   :  { %s105_s0 = inlined_call_operand.vmem [shape: f32[8,32], index: 0, kind: input, shape index: {}]   ;;  %s106_s1 = inlined_call_operand.vmem [shape: f32[8,32], index: 1, kind: input, shape index: {}]   ;;  %s107_s2 = inlined_call_operand.hbm [shape: c64[8,32], index: 2, kind: output, shape index: {}]  }
   0x1   :  { %s3_s11 = scalar_lea.hbm %s107_s2, 8 }
   0x2   :  { %4 = vsyncpa [#allocation0], 0  ;;  %s6_s14 = sshll.u32 %s105_s0, 4  ;;  %s8_s17 = sshll.u32 %s107_s2, 4  ;;  %s7_s14 = int_to_ptr.vmem [resolvable:$true] %s6_s14  ;;  %s9_s17 = int_to_ptr.hbm [resolvable:$true] %s8_s17 }
   0x3   :  { %11 = dma.vmem_to_hbm [thread:$0]  %s7_s14, 128, %s9_s17, [#allocation0] }
   0x4   :  { %74 = dma.done.wait [#allocation0], 128  }
   0x5   :  { %75 = vsyncadd [#allocation0], 4294967168 }
   0x6   :  { %14 = vsyncpa [#allocation0], 1 }
   0x7   :  { %15 = vsyncpa [#allocation1], 0  ;;  %s17_s20 = sshll.u32 %s106_s1, 4  ;;  %s19_s21 = sshll.u32 %s3_s11, 4  ;;  %s18_s20 = int_to_ptr.vmem [resolvable:$true] %s17_s20  ;;  %s20_s21 = int_to_ptr.hbm [resolvable:$true] %s19_s21 }
   0x8   :  { %22 = dma.vmem_to_hbm [thread:$0]  %s18_s20, 128, %s20_s21, [#allocation1] }
   0x9   :  { %76 = dma.done.wait [#allocation1], 128  }
   0xa   :  { %77 = vsyncadd [#allocation1], 4294967168 }
   0xb   :  { %25 = vsyncpa [#allocation1], 1 }

// kernel: _apply_operator.1
= control target key start
LH: loop header
LB: loop body
LE: loop exit
PB: predicated region body
PF: predicated region fallthrough
CT: control target
= control target key end

     0   :  { %11 = vsyncpa [#allocation3], 0  ;;  %s286_s0 = inlined_call_operand.vmem [shape: f32[8,128], index: 0, kind: input, shape index: {}]   ;;  %s287_s1 = inlined_call_operand.vmem [shape: f32[8,128], index: 1, kind: input, shape index: {}]   ;;  %s288_s2 = inlined_call_operand.hbm [shape: f32[128,128], index: 2, kind: input, shape index: {}]   ;;  %s289_s3 = inlined_call_operand.hbm [shape: f32[128,128], index: 3, kind: input, shape index: {}]   ;;  %s290_s4 = inlined_call_operand.vmem [shape: f32[8,128], index: 4, kind: output, shape index: {0}]   ;;  %s291_s5 = inlined_call_operand.vmem [shape: f32[8,128], index: 5, kind: output, shape index: {1}]  }
   0x1   :  { %s21_s20 = sshll.u32 %s288_s2, 4  ;;  %s22_s20 = int_to_ptr.hbm [resolvable:$true] %s21_s20 }
   0x2   :  { %12 = vsyncpa [#allocation5], 0  ;;  %s234_s21 = smov [#allocation2]   ;;  %s34_s25 = sshll.u32 %s289_s3, 4  ;;  %s35_s25 = int_to_ptr.hbm [resolvable:$true] %s34_s25 }
   0x3   :  { %s23_s22 = sshll.u32 %s234_s21, 4  ;;  %s235_s26 = smov 128   ;;  %s24_s22 = int_to_ptr.vmem [resolvable:$true] %s23_s22 }
   0x4   :  { %s236_s27 = smov 8   ;;  %s237_s28 = smov [#allocation4]  }
   0x5   :  { %29 = dma.hbm_to_vmem [thread:$0]  %s22_s20, 2048, %s24_s22, [#allocation3], %s235_s26, %s235_s26, %s236_s27  }
   0x6   :  { %s36_s29 = sshll.u32 %s237_s28, 4  ;;  %s37_s29 = int_to_ptr.vmem [resolvable:$true] %s36_s29 }
   0x7   :  { %42 = dma.hbm_to_vmem [thread:$0]  %s35_s25, 2048, %s37_s29, [#allocation5], %s235_s26, %s235_s26, %s236_s27  }
   0x8   :  { %230 = dma.done.wait [#allocation3], 2048  }
   0x9   :  { %231 = vsyncadd [#allocation3], 4294965248 }
   0xa   :  { %232 = dma.done.wait [#allocation5], 2048  }
   0xb   :  { %233 = vsyncadd [#allocation5], 4294965248  ;;  %v68_v0 = vld [vmem:[#allocation2 + $0x78] sm:$0xff]  ;;  %v67_v2 = vld [vmem:[#allocation2 + $0x70] sm:$0xff] }
   0xc   :  { %v84_v1 = vld [vmem:[#allocation4 + $0x78] sm:$0xff]  ;;  %127 = vmatpush.msra.mxu2 %v68_v0  ;;  %v83_v3 = vld [vmem:[#allocation4 + $0x70] sm:$0xff]  ;;  %v66_v4 = vld [vmem:[#allocation2 + $0x68] sm:$0xff]  ;;  %85 = vmatpush.msra.mxu0 %v68_v0 }
   0xd   :  { %147 = vmatpush.msra.mxu3 %v84_v1  ;;  %v82_v5 = vld [vmem:[#allocation4 + $0x68] sm:$0xff]  ;;  %105 = vmatpush.msra.mxu1 %v84_v1  ;;  %v65_v6 = vld [vmem:[#allocation2 + $0x60] sm:$0xff]  ;;  %v64_v8 = vld [vmem:[#allocation2 + $0x58] sm:$0xff] }
   0xe   :  { %128 = vmatpush.msra.mxu2 %v67_v2  ;;  %v81_v7 = vld [vmem:[#allocation4 + $0x60] sm:$0xff]  ;;  %86 = vmatpush.msra.mxu0 %v67_v2  ;;  %v80_v9 = vld [vmem:[#allocation4 + $0x58] sm:$0xff]  ;;  %v63_v10 = vld [vmem:[#allocation2 + $0x50] sm:$0xff] }
   0xf   :  { %148 = vmatpush.msra.mxu3 %v83_v3  ;;  %106 = vmatpush.msra.mxu1 %v83_v3  ;;  %v79_v11 = vld [vmem:[#allocation4 + $0x50] sm:$0xff]  ;;  %v62_v12 = vld [vmem:[#allocation2 + $0x48] sm:$0xff]  ;;  %v61_v14 = vld [vmem:[#allocation2 + $0x40] sm:$0xff] }
  0x10   :  { %129 = vmatpush.msra.mxu2 %v66_v4  ;;  %87 = vmatpush.msra.mxu0 %v66_v4  ;;  %v78_v13 = vld [vmem:[#allocation4 + $0x48] sm:$0xff]  ;;  %v77_v15 = vld [vmem:[#allocation4 + $0x40] sm:$0xff]  ;;  %v60_v16 = vld [vmem:[#allocation2 + $0x38] sm:$0xff] }
  0x11   :  { %149 = vmatpush.msra.mxu3 %v82_v5  ;;  %107 = vmatpush.msra.mxu1 %v82_v5  ;;  %v76_v17 = vld [vmem:[#allocation4 + $0x38] sm:$0xff]  ;;  %v59_v18 = vld [vmem:[#allocation2 + $0x30] sm:$0xff]  ;;  %v58_v20 = vld [vmem:[#allocation2 + $0x28] sm:$0xff] }
  0x12   :  { %130 = vmatpush.msra.mxu2 %v65_v6  ;;  %88 = vmatpush.msra.mxu0 %v65_v6  ;;  %v75_v19 = vld [vmem:[#allocation4 + $0x30] sm:$0xff]  ;;  %v74_v21 = vld [vmem:[#allocation4 + $0x28] sm:$0xff]  ;;  %v57_v22 = vld [vmem:[#allocation2 + $0x20] sm:$0xff] }
  0x13   :  { %150 = vmatpush.msra.mxu3 %v81_v7  ;;  %108 = vmatpush.msra.mxu1 %v81_v7  ;;  %v73_v23 = vld [vmem:[#allocation4 + $0x20] sm:$0xff]  ;;  %v56_v24 = vld [vmem:[#allocation2 + $0x18] sm:$0xff]  ;;  %v55_v26 = vld [vmem:[#allocation2 + $0x10] sm:$0xff] }
  0x14   :  { %131 = vmatpush.msra.mxu2 %v64_v8  ;;  %89 = vmatpush.msra.mxu0 %v64_v8  ;;  %v72_v25 = vld [vmem:[#allocation4 + $0x18] sm:$0xff]  ;;  %v71_v27 = vld [vmem:[#allocation4 + $0x10] sm:$0xff]  ;;  %v54_v28 = vld [vmem:[#allocation2 + $0x8] sm:$0xff] }
  0x15   :  { %151 = vmatpush.msra.mxu3 %v80_v9  ;;  %109 = vmatpush.msra.mxu1 %v80_v9  ;;  %v70_v29 = vld [vmem:[#allocation4 + $0x8] sm:$0xff]  ;;  %v53_v30 = vld [vmem:[#allocation2] sm:$0xff] }
  0x16   :  { %132 = vmatpush.msra.mxu2 %v63_v10  ;;  %90 = vmatpush.msra.mxu0 %v63_v10  ;;  %v69_v31 = vld [vmem:[#allocation4] sm:$0xff] }
  0x17   :  { %152 = vmatpush.msra.mxu3 %v79_v11  ;;  %110 = vmatpush.msra.mxu1 %v79_v11  ;;  %v52_v32 = vld [vmem:[%s287_s1] sm:$0xff] }
  0x18   :  { %133 = vmatpush.msra.mxu2 %v62_v12  ;;  %91 = vmatpush.msra.mxu0 %v62_v12  ;;  %v51_v33 = vld [vmem:[%s286_s0] sm:$0xff] }
  0x19   :  { %153 = vmatpush.msra.mxu3 %v78_v13  ;;  %111 = vmatpush.msra.mxu1 %v78_v13 }
  0x1a   :  { %134 = vmatpush.msra.mxu2 %v61_v14  ;;  %92 = vmatpush.msra.mxu0 %v61_v14 }
  0x1b   :  { %154 = vmatpush.msra.mxu3 %v77_v15  ;;  %112 = vmatpush.msra.mxu1 %v77_v15 }
  0x1c   :  { %135 = vmatpush.msra.mxu2 %v60_v16  ;;  %93 = vmatpush.msra.mxu0 %v60_v16 }
  0x1d   :  { %155 = vmatpush.msra.mxu3 %v76_v17  ;;  %113 = vmatpush.msra.mxu1 %v76_v17 }
  0x1e   :  { %136 = vmatpush.msra.mxu2 %v59_v18  ;;  %94 = vmatpush.msra.mxu0 %v59_v18 }
  0x1f   :  { %156 = vmatpush.msra.mxu3 %v75_v19  ;;  %114 = vmatpush.msra.mxu1 %v75_v19 }
  0x20   :  { %137 = vmatpush.msra.mxu2 %v58_v20  ;;  %95 = vmatpush.msra.mxu0 %v58_v20 }
  0x21   :  { %157 = vmatpush.msra.mxu3 %v74_v21  ;;  %115 = vmatpush.msra.mxu1 %v74_v21 }
  0x22   :  { %138 = vmatpush.msra.mxu2 %v57_v22  ;;  %96 = vmatpush.msra.mxu0 %v57_v22 }
  0x23   :  { %158 = vmatpush.msra.mxu3 %v73_v23  ;;  %116 = vmatpush.msra.mxu1 %v73_v23 }
  0x24   :  { %139 = vmatpush.msra.mxu2 %v56_v24  ;;  %97 = vmatpush.msra.mxu0 %v56_v24 }
  0x25   :  { %159 = vmatpush.msra.mxu3 %v72_v25  ;;  %117 = vmatpush.msra.mxu1 %v72_v25 }
  0x26   :  { %140 = vmatpush.msra.mxu2 %v55_v26  ;;  %98 = vmatpush.msra.mxu0 %v55_v26 }
  0x27   :  { %160 = vmatpush.msra.mxu3 %v71_v27  ;;  %118 = vmatpush.msra.mxu1 %v71_v27 }
  0x28   :  { %141 = vmatpush.msra.mxu2 %v54_v28  ;;  %99 = vmatpush.msra.mxu0 %v54_v28 }
  0x29   :  { %161 = vmatpush.msra.mxu3 %v70_v29  ;;  %119 = vmatpush.msra.mxu1 %v70_v29 }
  0x2a   :  { %142 = vmatpush.msra.mxu2 %v53_v30  ;;  %100 = vmatpush.msra.mxu0 %v53_v30 }
  0x2b   :  { %162 = vmatpush.msra.mxu3 %v69_v31  ;;  %143 = vmatmul.f32.vlgmr.msra.gmra.mxu2 %v52_v32 }
  0x2c   :  { %163 = vmatmul.f32.vlgmr.msra.gmra.mxu3 %v51_v33  ;;  %120 = vmatpush.msra.mxu1 %v69_v31 }
  0x2d   :  { %101 = vmatmul.f32.vlgmr.msra.gmra.mxu0 %v51_v33  ;;  %121 = vmatmul.f32.vlgmr.msra.gmra.mxu1 %v52_v32 }
  0xaa   :  { %v102_v34 = vpop.f32.mrf.mxu0  ;;  %v122_v35 = vpop.f32.mrf.mxu1 }
  0xab   :  { %v125_v36 = vsub.f32 %v102_v34, %v122_v35 }
  0xad   :  { %126 = vst [vmem:[%s290_s4] sm:$0xff] %v125_v36 }
  0xae   :  { %v144_v37 = vpop.f32.mrf.mxu2 }
  0xaf   :  { %v164_v38 = vpop.f32.mrf.mxu3 }
  0xb0   :  { %v165_v39 = vadd.f32 %v164_v38, %v144_v37 }
  0xb2   :  { %167 = vst [vmem:[%s291_s5] sm:$0xff] %v165_v39 }
  0xb3   :  { %176 = vsyncpa [#allocation3], 1 }
  0xb4   :  { %177 = vsyncpa [#allocation5], 1 }

</bundles_post_ra>
